<compile_context>
chip_gen: v7x
topology: tpu7x:2x2x1
jax: 0.10.0
libtpu: 0.0.40
codegen_flags: <defaults>
</compile_context>

<pallas_src>
import functools

import jax
import jax.numpy as jnp
from jax.experimental import pallas as pl
from jax.experimental.pallas import tpu as pltpu


_LANE = 128
_SUB = 8
_BIG = 1e6          # "infinite" 1-D distance sentinel (its square stays finite in f32)
_HUGE = 3.9e12      # > _BIG**2 + W**2 : "never wins the min" sentinel for EDT phase 2
_EDT_CHUNK = 128    # x' chunk width for exact EDT phase 2
_BLOCK_ROWS = 4096  # 4096 x 128 f32 = 2 MiB per input block (v5e-safe when double-buffered)


def _round_up(x, m):
    return ((x + m - 1) // m) * m


def _num_tensorcores():
    """TensorCores sharing one Pallas grid (v7x/v4/v5p: 2, v5e/v6e: 1)."""
    try:
        info = pltpu.get_tpu_info()
        n = getattr(info, "num_cores", None) or getattr(info, "core_count", None)
        if n:
            return int(n)
    except Exception:
        pass
    try:
        kind = jax.devices()[0].device_kind.lower()
    except Exception:
        return 1
    return 2 if any(tag in kind for tag in ("v7", "7x", "v4", "v5p")) else 1


# ---------------------------------------------------------------------------
# Pallas kernel: sum( mismatch ? dist : 0 ) over a lane-dense (rows, 128) layout.
# ---------------------------------------------------------------------------
def _hd_sum_kernel(m_ref, d_ref, out_ref):
    k = pl.program_id(1)

    @pl.when(k == 0)
    def _init():
        out_ref[...] = jnp.zeros_like(out_ref)

    # mismatch already pre-XOR'd in the wrapper: just select the distance term.
    contrib = jnp.where(m_ref[...] != 0, d_ref[...], 0.0)
    # Fold the (tr, 128) tile down to one (8, 128) vreg with pure VPU adds
    # (leading-axis reduction over whole vregs; no cross-lane XLU work per tile).
    out_ref[...] += contrib.reshape(-1, _SUB, _LANE).sum(axis=0)


def _hd_sum_pallas(mismatch_i8, dist_f32):
    """sum(mismatch * dist) over flat 1-D inputs, tiled along a (rows, 128) layout."""
    n = dist_f32.shape[0]
    rows = pl.cdiv(n, _LANE)

    # Block rows: multiple of 32 (int8 native sublane tiling), capped at 2 MiB of f32.
    tr = min(_BLOCK_ROWS, _round_up(rows, 32))
    n_tiles = pl.cdiv(rows, tr)

    num_cores = _num_tensorcores()
    num_splits = num_cores if (num_cores > 1 and n_tiles >= 2 * num_cores) else 1
    k_per_split = pl.cdiv(n_tiles, num_splits)
    rows_total = num_splits * k_per_split * tr
    n_pad = rows_total * _LANE

    if n_pad != n:
        # Only the two slim streams are padded (mismatch pads with 0 -> contributes 0).
        mismatch_i8 = jnp.pad(mismatch_i8, (0, n_pad - n))
        dist_f32 = jnp.pad(dist_f32, (0, n_pad - n))

    m2 = mismatch_i8.reshape(rows_total, _LANE)
    d2 = dist_f32.reshape(rows_total, _LANE)

    in_spec = pl.BlockSpec((tr, _LANE), lambda p, k: (p * k_per_split + k, 0))
    out_spec = pl.BlockSpec((_SUB, _LANE), lambda p, k: (p, 0))

    cost = pl.CostEstimate(
        flops=2 * n_pad,
        transcendentals=0,
        bytes_accessed=5 * n_pad + num_splits * _SUB * _LANE * 4,
    )

    out = pl.pallas_call(
        _hd_sum_kernel,
        grid=(num_splits, k_per_split),
        out_shape=jax.ShapeDtypeStruct((num_splits * _SUB, _LANE), jnp.float32),
        in_specs=[in_spec, in_spec],
        out_specs=out_spec,
        compiler_params=pltpu.CompilerParams(
            dimension_semantics=("parallel", "arbitrary")),
        cost_estimate=cost,
    )(m2, d2)
    # Each split's (8,128) block holds partial sums; tiny final reduce in XLA.
    return jnp.sum(out)


# ---------------------------------------------------------------------------
# Glue: exact separable squared euclidean distance transform (scipy edt equivalent).
# Phase 1: exact 1-D column distance.  Phase 2: per-row lower-envelope min,
# chunked over x' so no (H, W, W) intermediate is ever materialized.
# Returns SQUARED distances (no sqrt needed for alpha == 2).
# ---------------------------------------------------------------------------
def _dist_to_nearest_zero_1d(m):
    """Exact 1-D distance (along axis 0) to the nearest False in each column.

    m: (H, W) bool. Returns (H, W) float32; _BIG where a column has no False.
    """
    h = m.shape[0]
    idx = jnp.arange(h, dtype=jnp.float32)[:, None]
    prev_zero = jax.lax.cummax(jnp.where(m, -_BIG, idx), axis=0)
    next_zero = jax.lax.cummin(jnp.where(m, 2.0 * _BIG, idx), axis=0, reverse=True)
    d = jnp.minimum(idx - prev_zero, next_zero - idx)
    return jnp.minimum(d, _BIG)


def _edt_sq_2d(m):
    """Squared EDT of a 2-D bool mask: squared distance to nearest False (0 where False)."""
    h, w = m.shape
    g = _dist_to_nearest_zero_1d(m)                # phase 1: per-column along axis 0
    g2 = g * g                                     # (H, W)
    x = jnp.arange(w, dtype=jnp.float32)

    chunk = min(_EDT_CHUNK, w)
    w_pad = _round_up(w, chunk)
    if w_pad != w:
        g2p = jnp.pad(g2, ((0, 0), (0, w_pad - w)), constant_values=_HUGE)
        xp = jnp.pad(x, (0, w_pad - w))            # padded x' never wins: g2 = _HUGE there
    else:
        g2p, xp = g2, x
    n_chunks = w_pad // chunk

    def body(c, best):
        xs = jax.lax.dynamic_slice(xp, (c * chunk,), (chunk,))          # (chunk,)
        gs = jax.lax.dynamic_slice(g2p, (0, c * chunk), (h, chunk))     # (H, chunk)
        off2 = (x[:, None] - xs[None, :]) ** 2                          # (W, chunk)
        cand = jnp.min(gs[:, None, :] + off2[None, :, :], axis=-1)      # (H, W)
        return jnp.minimum(best, cand)

    init = jnp.full((h, w), _HUGE, dtype=jnp.float32)
    return jax.lax.fori_loop(0, n_chunks, body, init)


def _distance_field_pow(fg_masks, alpha):
    """(distance_field ** alpha) per batch for a (B, H, W) boolean foreground mask.

    Matches HausdorffDTLoss.distance_field followed by `** alpha`: since edt(fg) and
    edt(bg) have disjoint support, (edt(fg)+edt(bg))**a == edt(fg)**a + edt(bg)**a.
    """
    def per_batch(fg):
        bg = ~fg
        has_fg = jnp.any(fg)
        has_bg = jnp.any(bg)
        fg_d2 = _edt_sq_2d(fg)       # squared dist to nearest background (0 on bg)
        bg_d2 = _edt_sq_2d(bg)       # squared dist to nearest foreground (0 on fg)
        if alpha == 2.0:
            fg_pow, bg_pow = fg_d2, bg_d2            # alpha == 2: squared EDT used directly
        else:
            fg_pow = fg_d2 ** (alpha * 0.5)
            bg_pow = bg_d2 ** (alpha * 0.5)
        # TODO(synk): scipy edt is ill-defined when a mask has no zeros; that term -> 0 here.
        field = jnp.where(has_bg, fg_pow, 0.0) + jnp.where(has_fg, bg_pow, 0.0)
        return jnp.where(has_fg, field, jnp.zeros_like(field))

    return jax.vmap(per_batch)(fg_masks)


@functools.partial(jax.jit, static_argnames=("alpha",))
def _hausdorff_class_loss(pred, target, alpha):
    b, c, h, w = pred.shape
    pred = pred.astype(jnp.float32)
    target = target.astype(jnp.float32)

    pred_bin = pred[:, 0] >= 0.5                    # (B, H, W) bool
    tgt_bin = target[:, 0] >= 0.5

    # Fused "distance" term pred_dt**alpha + target_dt**alpha -> one f32 stream.
    dist = (_distance_field_pow(pred_bin, alpha)
            + _distance_field_pow(tgt_bin, alpha)).reshape(-1)

    # pred_error = (pred_bin - tgt_bin)**2 == XOR of the binarized masks -> one int8 stream.
    mismatch = (pred_bin ^ tgt_bin).astype(jnp.int8).reshape(-1)

    hd_sum = _hd_sum_pallas(mismatch, dist)
    return hd_sum / (b * c * h * w)                 # dt_field.mean()


# ---------------------------------------------------------------------------
# Module wrapper (mirrors PyTorch HausdorffDTLoss.forward incl. min/max state).
# ---------------------------------------------------------------------------
class HausdorffDTLossPallas:
    """Binary Hausdorff loss based on distance transform (Pallas/JAX port)."""

    def __init__(self, alpha=2.0, **kwargs):
        self.alpha = float(alpha)
        self.min_loss = float("inf")
        self.max_loss = float("-inf")

    def update_min_max_loss(self, loss):
        self.min_loss = min(self.min_loss, loss)
        self.max_loss = max(self.max_loss, loss)

    def normalize_loss(self, loss):
        return (loss - self.min_loss) / (self.max_loss - self.min_loss + 1e-08)

    def __call__(self, pred, target):
        # TODO(synk): 3D (b, 1, x, y, z) volumes and the debug=True return path not ported.
        assert pred.ndim == 4, "Only 2D (b, 1, x, y) supported in this port"
        assert target.ndim == pred.ndim, "Target should have the same dimension as prediction"
        assert pred.shape[1] == 1, "Uses one binary channel"

        class_loss = _hausdorff_class_loss(
            jnp.asarray(pred), jnp.asarray(target), alpha=self.alpha)
        # Single host sync at the very end (reference uses .item() for the min/max state).
        loss_val = float(jax.device_get(class_loss))
        self.update_min_max_loss(loss_val)
        return jnp.float32(self.normalize_loss(loss_val))


if __name__ == "__main__":
    key = jax.random.PRNGKey(0)
    k1, k2 = jax.random.split(key)
    # pred: (b, 1, x, y) scores in [0, 1]; target: binary mask of same shape.
    pred = jax.random.uniform(k1, (2, 1, 16, 16), dtype=jnp.float32)
    target = (jax.random.uniform(k2, (2, 1, 16, 16)) > 0.5).astype(jnp.float32)

    loss_fn = HausdorffDTLossPallas()
    out = loss_fn(pred, target)
    jax.block_until_ready(out)
    print("KERNEL_OK")
</pallas_src>

<mosaic_0001>
module attributes {stable_mosaic.version = 11 : i64} {
  func.func @_hd_sum_kernel(%arg0: i32, %arg1: i32, %arg2: memref<32x128xi8, #tpu.memory_space<vmem>>, %arg3: memref<32x128xf32, #tpu.memory_space<vmem>>, %arg4: memref<8x128xf32, #tpu.memory_space<vmem>>) attributes {dimension_semantics = [#tpu.dimension_semantics<parallel>, #tpu.dimension_semantics<arbitrary>], iteration_bounds = array<i64: 1, 1>, scalar_prefetch = 0 : i64, scratch_operands = 0 : i64, tpu.core_type = #tpu.core_type<tc>, window_params = [{transform_indices = @transform_0, window_bounds = array<i64: 32, 128>}, {transform_indices = @transform_1, window_bounds = array<i64: 32, 128>}, {transform_indices = @transform_2, window_bounds = array<i64: 8, 128>}]} {
    %c0_i32 = arith.constant 0 : i32
    %0 = arith.cmpi eq, %arg1, %c0_i32 : i32
    %1 = arith.extui %0 : i1 to i32
    %c0_i32_0 = arith.constant 0 : i32
    %2 = arith.cmpi ne, %1, %c0_i32_0 : i32
    scf.if %2 {
      %cst_9 = arith.constant 0.000000e+00 : f32
      %14 = vector.broadcast %cst_9 : f32 to vector<8x128xf32>
      %c0_10 = arith.constant 0 : index
      %c0_11 = arith.constant 0 : index
      %15 = vector.load %arg4[%c0_10, %c0_11] : memref<8x128xf32, #tpu.memory_space<vmem>>, vector<8x128xf32>
      tpu.vector_store %arg4[%c0_10, %c0_11], %14 {strides = array<i32>} : memref<8x128xf32, #tpu.memory_space<vmem>>, vector<8x128xf32>,
    } else {
    }
    %c0 = arith.constant 0 : index
    %c0_1 = arith.constant 0 : index
    %3 = vector.load %arg2[%c0, %c0_1] : memref<32x128xi8, #tpu.memory_space<vmem>>, vector<32x128xi8>
    %c0_i8 = arith.constant 0 : i8
    %4 = vector.broadcast %c0_i8 : i8 to vector<32x128xi8>
    %5 = arith.cmpi ne, %3, %4 : vector<32x128xi8>
    %c0_2 = arith.constant 0 : index
    %c0_3 = arith.constant 0 : index
    %6 = vector.load %arg3[%c0_2, %c0_3] : memref<32x128xf32, #tpu.memory_space<vmem>>, vector<32x128xf32>
    %cst = arith.constant 0.000000e+00 : f32
    %7 = vector.broadcast %cst : f32 to vector<32x128xf32>
    %8 = arith.select %5, %6, %7 : vector<32x128xi1>, vector<32x128xf32>
    %c0_4 = arith.constant 0 : index
    %c0_5 = arith.constant 0 : index
    %9 = vector.load %arg4[%c0_4, %c0_5] : memref<8x128xf32, #tpu.memory_space<vmem>>, vector<8x128xf32>
    %10 = vector.shape_cast %8 : vector<32x128xf32> to vector<4x8x128xf32>
    %cst_6 = arith.constant dense<0.000000e+00> : vector<8x128xf32>
    %11 = vector.multi_reduction <add>, %10, %cst_6 [0] : vector<4x8x128xf32> to vector<8x128xf32>
    %12 = arith.addf %9, %11 : vector<8x128xf32>
    %c0_7 = arith.constant 0 : index
    %c0_8 = arith.constant 0 : index
    %13 = vector.load %arg4[%c0_7, %c0_8] : memref<8x128xf32, #tpu.memory_space<vmem>>, vector<8x128xf32>
    tpu.vector_store %arg4[%c0_7, %c0_8], %12 {strides = array<i32>} : memref<8x128xf32, #tpu.memory_space<vmem>>, vector<8x128xf32>,
    return
  }
  func.func @transform_0(%arg0: i32, %arg1: i32) -> (i32, i32) {
    %c1_i32 = arith.constant 1 : i32
    %0 = arith.muli %arg0, %c1_i32 : i32
    %1 = arith.addi %0, %arg1 : i32
    %c0_i32 = arith.constant 0 : i32
    %c0_i32_0 = arith.constant 0 : i32
    return %1, %c0_i32 : i32, i32
  }
  func.func @transform_1(%arg0: i32, %arg1: i32) -> (i32, i32) {
    %c1_i32 = arith.constant 1 : i32
    %0 = arith.muli %arg0, %c1_i32 : i32
    %1 = arith.addi %0, %arg1 : i32
    %c0_i32 = arith.constant 0 : i32
    %c0_i32_0 = arith.constant 0 : i32
    return %1, %c0_i32 : i32, i32
  }
  func.func @transform_2(%arg0: i32, %arg1: i32) -> (i32, i32) {
    %c0_i32 = arith.constant 0 : i32
    %c0_i32_0 = arith.constant 0 : i32
    return %arg0, %c0_i32 : i32, i32
  }
}

</mosaic_0001>

<bundles_post_ra>
// kernel: _hausdorff_class_loss.1
= control target key start
LH: loop header
LB: loop body
LE: loop exit
PB: predicated region body
PF: predicated region fallthrough
CT: control target
= control target key end

     0   :  { %v120_v1 = vmov 0   ;;  %s154_s0 = inlined_call_operand.vmem [shape: s8[32,128], index: 0, kind: input, shape index: {}]   ;;  %s155_s1 = inlined_call_operand.vmem [shape: f32[32,128], index: 1, kind: input, shape index: {}]   ;;  %s156_s2 = inlined_call_operand.vmem [shape: f32[8,128], index: 2, kind: output, shape index: {}]  }
   0x1   :  { %v57_v0 = vld [vmem:[%s154_s0] sm:$0xff]  ;;  %v60_v19 = vld [vmem:[%s155_s1 + $0x8] sm:$0xff]  ;;  %v61_v20 = vld [vmem:[%s155_s1 + $0x10] sm:$0xff] }
   0x2   :  { %vm58_vm0 = vnez %v57_v0  ;;  %v59_v18 = vld [vmem:[%s155_s1] sm:$0xff]  ;;  %v62_v26 = vld [vmem:[%s155_s1 + $0x18] sm:$0xff] }
   0x3   :  { %v63_v2 = vsel %vm58_vm0, 16843009, %v120_v1 }
   0x4   :  { %v64_v3 = vunpack.c.0.s8 %v63_v2  ;;  %v65_v4 = vunpack.c.1.s8 %v63_v2  ;;  %v66_v5 = vunpack.c.2.s8 %v63_v2  ;;  %v67_v6 = vunpack.c.3.s8 %v63_v2 }
   0x6   :  { %v68_v7 = vpack.c.b16 %v64_v3, %v64_v3  ;;  %v70_v8 = vpack.c.b16 %v65_v4, %v65_v4  ;;  %v72_v9 = vpack.c.b16 %v66_v5, %v66_v5  ;;  %v74_v10 = vpack.c.b16 %v67_v6, %v67_v6 }
   0x8   :  { %v69_v11 = vpack.c.b8 %v68_v7, %v68_v7  ;;  %v71_v12 = vpack.c.b8 %v70_v8, %v70_v8  ;;  %v73_v13 = vpack.c.b8 %v72_v9, %v72_v9  ;;  %v75_v14 = vpack.c.b8 %v74_v10, %v74_v10 }
   0xa   :  { %vm76_vm1 = vnez %v69_v11  ;;  %vm77_vm2 = vnez %v71_v12  ;;  %vm78_vm3 = vnez %v73_v13  ;;  %vm79_vm4 = vnez %v75_v14 }
   0xb   :  { %v80_v15 = vsel %vm76_vm1, 16843009, %v120_v1  ;;  %v81_v16 = vsel %vm77_vm2, 16843009, %v120_v1  ;;  %v82_v17 = vsel %vm78_vm3, 16843009, %v120_v1 }
   0xc   :  { %v83_v21 = vsel %vm79_vm4, 16843009, %v120_v1  ;;  %v84_v22 = vunpack.c.0.s8 %v80_v15  ;;  %v85_v23 = vunpack.c.0.s8 %v81_v16  ;;  %v86_v24 = vunpack.c.0.s8 %v82_v17 }
   0xd   :  { %v87_v25 = vunpack.c.0.s8 %v83_v21 }
   0xe   :  { %vm88_vm5 = vcmp.ne.s32.totalorder %v84_v22, 0  ;;  %vm89_vm6 = vcmp.ne.s32.totalorder %v85_v23, 0  ;;  %vm90_vm7 = vcmp.ne.s32.totalorder %v86_v24, 0 }
   0xf   :  { %vm91_vm8 = vcmp.ne.s32.totalorder %v87_v25, 0  ;;  %v92_v27 = vsel %vm88_vm5, %v59_v18, 0.0  ;;  %v93_v28 = vsel %vm89_vm6, %v60_v19, 0.0  ;;  %v94_v29 = vsel %vm90_vm7, %v61_v20, 0.0 }
  0x10   :  { %v97_v30 = vadd.f32 %v93_v28, %v92_v27  ;;  %v95_v31 = vsel %vm91_vm8, %v62_v26, 0.0 }
  0x12   :  { %v98_v32 = vadd.f32 %v97_v30, %v94_v29 }
  0x14   :  { %v99_v33 = vadd.f32 %v98_v32, %v95_v31 }
  0x16   :  { %101 = vst [vmem:[%s156_s2] sm:$0xff] %v99_v33 }

</bundles_post_ra>
